<compile_context>
chip_gen: v7x
topology: tpu7x:2x2x1
jax: 0.10.0
libtpu: 0.0.40
codegen_flags: <defaults>
</compile_context>

<pallas_src>
import functools
import math

import jax
import jax.numpy as jnp
from jax import lax
from jax.experimental import pallas as pl
from jax.experimental.pallas import tpu as pltpu


_MXU_DTYPE = jnp.bfloat16   # MXU / inter-kernel dtype (float32 accumulation everywhere)


@functools.lru_cache(maxsize=None)
def _vmem_limit_bytes():
    """Chip-aware scoped VMEM limit: ~half of physical VMEM, clamped to [32, 96] MiB.
    (v5e/v6e: 128 MiB physical -> 64 MiB scoped; v7x: 64 MiB physical -> 32 MiB.)"""
    cap = 128 * 1024 * 1024
    try:
        cap = int(pltpu.get_tpu_info().vmem_capacity_bytes)
    except Exception:
        pass
    return max(32 * 1024 * 1024, min(cap // 2, 96 * 1024 * 1024))


def _tile(dim, target, unit):
    """Largest tile <= target that divides `dim` and is a multiple of `unit`.
    Fallback is the FULL dim (always legal: 'equal to the full array dim'
    satisfies the (8,128) BlockSpec rule and is always correct, at the cost of
    a bigger block for awkward sizes)."""
    if dim <= target:
        return dim
    t = (target // unit) * unit
    while t >= unit:
        if dim % t == 0:
            return t
        t -= unit
    return dim


# ----------------------------- Pallas kernels ------------------------------ #

def _linear_kernel(x_ref, w_ref, o_ref, acc_ref):
    # x: (tm, tk) bf16, w: (tk, tn) bf16 (pre-transposed weight) -> o: (tm, tn)
    @pl.when(pl.program_id(2) == 0)
    def _init():
        acc_ref[...] = jnp.zeros_like(acc_ref)

    acc_ref[...] += jnp.dot(x_ref[...], w_ref[...],
                            preferred_element_type=jnp.float32)

    @pl.when(pl.program_id(2) == pl.num_programs(2) - 1)
    def _finalize():
        o_ref[...] = acc_ref[...].astype(o_ref.dtype)


def _linear_bias_kernel(x_ref, w_ref, b_ref, o_ref, acc_ref):
    # x: (tm, tk), w: (tk, tn), b: (1, tn) f32 -> o: (tm, tn)
    @pl.when(pl.program_id(2) == 0)
    def _init():
        acc_ref[...] = jnp.zeros_like(acc_ref)

    acc_ref[...] += jnp.dot(x_ref[...], w_ref[...],
                            preferred_element_type=jnp.float32)

    @pl.when(pl.program_id(2) == pl.num_programs(2) - 1)
    def _finalize():
        o_ref[...] = (acc_ref[...] + b_ref[...]).astype(o_ref.dtype)


def _linear_qkv_kernel(x_ref, wq_ref, wk_ref, wv_ref, q_ref, k_ref, v_ref,
                       qacc, kacc, vacc):
    # One read of x per K step drives three matmuls -> three separate outputs
    # (no wrapper-side lane slicing of a fused (M, 3*d_model) tensor).
    @pl.when(pl.program_id(2) == 0)
    def _init():
        qacc[...] = jnp.zeros_like(qacc)
        kacc[...] = jnp.zeros_like(kacc)
        vacc[...] = jnp.zeros_like(vacc)

    x = x_ref[...]
    qacc[...] += jnp.dot(x, wq_ref[...], preferred_element_type=jnp.float32)
    kacc[...] += jnp.dot(x, wk_ref[...], preferred_element_type=jnp.float32)
    vacc[...] += jnp.dot(x, wv_ref[...], preferred_element_type=jnp.float32)

    @pl.when(pl.program_id(2) == pl.num_programs(2) - 1)
    def _finalize():
        q_ref[...] = qacc[...].astype(q_ref.dtype)
        k_ref[...] = kacc[...].astype(k_ref.dtype)
        v_ref[...] = vacc[...].astype(v_ref.dtype)


def _make_attn_kernel(num_heads, dk, scale, has_mask):
    """Flash-style (online softmax over Sk tiles) multi-head attention kernel.

    Block shapes:
      q: (1, tq, E) bf16   k/v: (1, tkv, E) bf16   mask: (1, 1|tq, tkv) bf16
      o: (1, tq, E) bf16 (lane-dense, already in (B, S, h*dk) layout)
    Scratch (persist across the Sk grid axis):
      m_ref: (h, tq, 1) f32   l_ref: (h, tq, 1) f32   acc_ref: (h, tq, dk) f32
    """
    def kernel(*refs):
        if has_mask:
            q_ref, k_ref, v_ref, msk_ref, o_ref, m_ref, l_ref, acc_ref = refs
        else:
            q_ref, k_ref, v_ref, o_ref, m_ref, l_ref, acc_ref = refs
        j = pl.program_id(2)

        @pl.when(j == 0)
        def _init():
            m_ref[...] = jnp.full_like(m_ref, -jnp.inf)
            l_ref[...] = jnp.zeros_like(l_ref)
            acc_ref[...] = jnp.zeros_like(acc_ref)

        q = q_ref[0]          # (tq, E)  bf16
        k = k_ref[0]          # (tkv, E) bf16
        v = v_ref[0]          # (tkv, E) bf16
        if has_mask:
            # masked_fill(mask == 0, -inf) -> additive bias with a large finite
            # negative (no in-kernel select per score, no inf-inf NaNs).
            bias = jnp.where(msk_ref[0] != 0, 0.0, -1e30).astype(jnp.float32)

        for head in range(num_heads):            # static unroll over heads
            lo = head * dk
            qh = q[:, lo:lo + dk]                 # (tq, dk)
            kh = k[:, lo:lo + dk]                 # (tkv, dk)
            vh = v[:, lo:lo + dk]                 # (tkv, dk)
            # Q @ K^T without transposing the K tile (contract last dims).
            s = lax.dot_general(qh, kh, (((1,), (1,)), ((), ())),
                                preferred_element_type=jnp.float32)
            s = s * scale
            if has_mask:
                s = s + bias
            m_prev = m_ref[head]                                   # (tq, 1)
            m_new = jnp.maximum(m_prev, jnp.max(s, axis=-1, keepdims=True))
            alpha = jnp.exp(m_prev - m_new)
            p = jnp.exp(s - m_new)                                  # f32 (tq, tkv)
            l_ref[head] = alpha * l_ref[head] + jnp.sum(p, axis=-1, keepdims=True)
            acc_ref[head] = alpha * acc_ref[head] + jnp.dot(
                p.astype(_MXU_DTYPE), vh, preferred_element_type=jnp.float32)
            m_ref[head] = m_new
            # (dropout on p would go here; identity in eval mode)

        @pl.when(j == pl.num_programs(2) - 1)
        def _finalize():
            for head in range(num_heads):
                lo = head * dk
                o_ref[0, :, lo:lo + dk] = (
                    acc_ref[head] * pl.reciprocal(l_ref[head], approx=True)
                ).astype(o_ref.dtype)

    return kernel


# ------------------------------ JAX wrappers -------------------------------- #

def _linear_specs(M, K, N, tm_target, tn_target, tk_target):
    tm = _tile(M, tm_target, 8)
    tk = _tile(K, tk_target, 128)
    tn = _tile(N, tn_target, 128)
    grid = (M // tm, N // tn, K // tk)
    x_spec = pl.BlockSpec((tm, tk), lambda i, j, k: (i, k))
    w_spec = pl.BlockSpec((tk, tn), lambda i, j, k: (k, j))
    o_spec = pl.BlockSpec((tm, tn), lambda i, j, k: (i, j))
    return tm, tn, tk, grid, x_spec, w_spec, o_spec


def _pallas_linear(x2d, w_t, bias=None, *, out_dtype=_MXU_DTYPE,
                   tm_target=512, tn_target=512, tk_target=1024):
    """x2d: (M, K) bf16 activations; w_t: (K, N) bf16 pre-transposed weight."""
    M, K = x2d.shape
    Kw, N = w_t.shape
    assert K == Kw, (K, Kw)
    tm, tn, tk, grid, x_spec, w_spec, o_spec = _linear_specs(
        M, K, N, tm_target, tn_target, tk_target)

    cost = pl.CostEstimate(
        flops=2 * M * N * K,
        transcendentals=0,
        bytes_accessed=(M * K * 2 + K * N * 2 + M * N * jnp.dtype(out_dtype).itemsize),
    )
    cparams = pltpu.CompilerParams(
        dimension_semantics=("parallel", "parallel", "arbitrary"),
        vmem_limit_bytes=_vmem_limit_bytes(),
    )
    scratch = [pltpu.VMEM((tm, tn), jnp.float32)]

    if bias is None:
        return pl.pallas_call(
            _linear_kernel,
            grid=grid,
            in_specs=[x_spec, w_spec],
            out_specs=o_spec,
            out_shape=jax.ShapeDtypeStruct((M, N), out_dtype),
            scratch_shapes=scratch,
            compiler_params=cparams,
            cost_estimate=cost,
        )(x2d, w_t)

    b_spec = pl.BlockSpec((1, tn), lambda i, j, k: (0, j))
    return pl.pallas_call(
        _linear_bias_kernel,
        grid=grid,
        in_specs=[x_spec, w_spec, b_spec],
        out_specs=o_spec,
        out_shape=jax.ShapeDtypeStruct((M, N), out_dtype),
        scratch_shapes=scratch,
        compiler_params=cparams,
        cost_estimate=cost,
    )(x2d, w_t, bias.reshape(1, N).astype(jnp.float32))


def _pallas_linear_qkv(x2d, wq_t, wk_t, wv_t, *,
                       tm_target=512, tn_target=512, tk_target=1024):
    """Fused QKV projection: one HBM pass over x, three separate bf16 outputs."""
    M, K = x2d.shape
    N = wq_t.shape[1]
    assert wq_t.shape == wk_t.shape == wv_t.shape == (K, N)
    tm, tn, tk, grid, x_spec, w_spec, o_spec = _linear_specs(
        M, K, N, tm_target, tn_target, tk_target)

    out_sds = jax.ShapeDtypeStruct((M, N), _MXU_DTYPE)
    cost = pl.CostEstimate(
        flops=3 * 2 * M * N * K,
        transcendentals=0,
        bytes_accessed=(M * K * 2 + 3 * K * N * 2 + 3 * M * N * 2),
    )
    return pl.pallas_call(
        _linear_qkv_kernel,
        grid=grid,
        in_specs=[x_spec, w_spec, w_spec, w_spec],
        out_specs=(o_spec, o_spec, o_spec),
        out_shape=(out_sds, out_sds, out_sds),
        scratch_shapes=[pltpu.VMEM((tm, tn), jnp.float32)] * 3,
        compiler_params=pltpu.CompilerParams(
            dimension_semantics=("parallel", "parallel", "arbitrary"),
            vmem_limit_bytes=_vmem_limit_bytes()),
        cost_estimate=cost,
    )(x2d, wq_t, wk_t, wv_t)


def _pallas_attention(q_proj, k_proj, v_proj, mask, num_heads, dk, *,
                      tq_target=256, tkv_target=512):
    """q_proj: (B, Sq, h*dk) bf16; k/v_proj: (B, Sk, h*dk) bf16;
    mask: None or bf16 (B|1, Sq|1, Sk) 0/1 mask. Returns (B, Sq, h*dk) bf16."""
    B, Sq, E = q_proj.shape
    Sk = k_proj.shape[1]
    scale = 1.0 / math.sqrt(dk)
    tq = _tile(Sq, tq_target, 8)
    tkv = _tile(Sk, tkv_target, 128)
    # batch outer, q-tile middle (both parallel -> both TCs get work), Sk
    # innermost "arbitrary" so the online-softmax accumulators stream K/V.
    grid = (B, Sq // tq, Sk // tkv)

    in_specs = [
        pl.BlockSpec((1, tq, E), lambda b, i, j: (b, i, 0)),
        pl.BlockSpec((1, tkv, E), lambda b, i, j: (b, j, 0)),
        pl.BlockSpec((1, tkv, E), lambda b, i, j: (b, j, 0)),
    ]
    inputs = [q_proj, k_proj, v_proj]
    has_mask = mask is not None
    mask_bytes = 0
    if has_mask:
        mb, mq, mk = mask.shape
        assert mk == Sk, (mk, Sk)
        assert mb in (1, B) and mq in (1, Sq), mask.shape
        if mb != 1 and mq != 1:
            mmap = lambda b, i, j: (b, i, j)
        elif mb != 1:
            mmap = lambda b, i, j: (b, 0, j)
        elif mq != 1:
            mmap = lambda b, i, j: (0, i, j)
        else:
            mmap = lambda b, i, j: (0, 0, j)
        in_specs.append(pl.BlockSpec((1, tq if mq != 1 else 1, tkv), mmap))
        inputs.append(mask)
        mask_bytes = mb * mq * mk * 2 * (Sq // tq if mq == 1 else 1)

    cost = pl.CostEstimate(
        flops=4 * B * Sq * Sk * E,
        transcendentals=B * num_heads * Sq * Sk,
        bytes_accessed=(2 * B * Sq * E * 2            # q read + o write (bf16)
                        + 2 * B * Sk * E * 2 * (Sq // tq)  # k/v streamed per q tile
                        + mask_bytes),
    )

    return pl.pallas_call(
        _make_attn_kernel(num_heads, dk, scale, has_mask),
        grid=grid,
        in_specs=in_specs,
        out_specs=pl.BlockSpec((1, tq, E), lambda b, i, j: (b, i, 0)),
        out_shape=jax.ShapeDtypeStruct((B, Sq, E), _MXU_DTYPE),
        scratch_shapes=[
            pltpu.VMEM((num_heads, tq, 1), jnp.float32),   # running row max
            pltpu.VMEM((num_heads, tq, 1), jnp.float32),   # running denominator
            pltpu.VMEM((num_heads, tq, dk), jnp.float32),  # running numerator
        ],
        compiler_params=pltpu.CompilerParams(
            dimension_semantics=("parallel", "parallel", "arbitrary"),
            vmem_limit_bytes=_vmem_limit_bytes()),
        cost_estimate=cost,
    )(*inputs)


def multi_headed_attention(params, query, key, value, mask=None):
    """Mirrors MultiHeadedAttention.forward (eval mode, dropout = identity).

    query/key/value: (B, S, d_k*h) float32
    mask:            broadcastable to (B, Sq, Sk) (like mask.unsqueeze(1)) or None
    returns:         (B, Sq, h*d_v) float32
    """
    h = params["h"]
    d_model = params["d_model"]
    dk = d_model // h

    B, Sq, _ = query.shape
    Sk = key.shape[1]

    # bf16 activations into the projection kernels (the MXU runs bf16 anyway).
    q_in = query.astype(_MXU_DTYPE)

    fused = (query is key) and (key is value) and (
        params["wq_t"].shape == params["wk_t"].shape == params["wv_t"].shape)
    if fused:
        qf, kf, vf = _pallas_linear_qkv(q_in.reshape(B * Sq, -1),
                                        params["wq_t"], params["wk_t"], params["wv_t"])
        q_proj = qf.reshape(B, Sq, d_model)
        k_proj = kf.reshape(B, Sq, d_model)
        v_proj = vf.reshape(B, Sq, d_model)
    else:
        k_in = key.astype(_MXU_DTYPE)
        v_in = value.astype(_MXU_DTYPE)
        q_proj = _pallas_linear(q_in.reshape(B * Sq, -1),
                                params["wq_t"]).reshape(B, Sq, d_model)
        k_proj = _pallas_linear(k_in.reshape(B * Sk, -1),
                                params["wk_t"]).reshape(B, Sk, d_model)
        v_proj = _pallas_linear(v_in.reshape(B * Sk, -1),
                                params["wv_t"]).reshape(B, Sk, d_model)

    # Compact 0/1 bf16 mask; NO (B, Sq, Sk) f32 bias is materialized. Batch /
    # query broadcasting is handled by the BlockSpec index_map, so a padding
    # mask stays (B, 1, Sk) in HBM.
    if mask is None:
        mask_c = None
    else:
        m = jnp.asarray(mask)
        if m.ndim == 2:
            m = m[None]
        mask_c = (m != 0).astype(_MXU_DTYPE)

    # Scaled dot-product attention: all heads per (batch, q-tile), K/V streamed
    # in Sk tiles (online softmax), lane-dense (tq, h*dk) output in (B,S,E)
    # layout -> no head split/merge transposes ever touch HBM.
    ctx = _pallas_attention(q_proj, k_proj, v_proj, mask_c, h, dk)   # (B, Sq, E) bf16

    # Output linear (with bias), float32 result to match the reference module.
    out = _pallas_linear(ctx.reshape(B * Sq, d_model), params["wo_t"], params["bo"],
                         out_dtype=jnp.float32)
    return out.reshape(B, Sq, -1)


def init_params(key, h, d_model, d_k, d_v, weight_dtype=_MXU_DTYPE):
    """Parameters matching the PyTorch module's shapes.

    Weights are stored pre-transposed ((in, out) layout) in bf16 so kernels
    never materialize weight.T per call; the MXU uses bf16 inputs with f32
    accumulation."""
    ks = jax.random.split(key, 5)
    scale = 0.05
    # nn.Linear layout is (out_features, in_features); draw, then transpose once.
    wq = scale * jax.random.normal(ks[0], (d_model, d_k * h), jnp.float32)
    wk = scale * jax.random.normal(ks[1], (d_model, d_k * h), jnp.float32)
    wv = scale * jax.random.normal(ks[2], (d_model, d_v * h), jnp.float32)
    wo = scale * jax.random.normal(ks[3], (h * d_v, d_model), jnp.float32)
    bo = scale * jax.random.normal(ks[4], (h * d_v,), jnp.float32)
    return {
        "h": h,
        "d_model": d_model,
        "wq_t": wq.T.astype(weight_dtype),
        "wk_t": wk.T.astype(weight_dtype),
        "wv_t": wv.T.astype(weight_dtype),
        "wo_t": wo.T.astype(weight_dtype),
        "bo": bo,
    }


def _reference_mha(params, query, key, value, mask=None):
    """Pure-JAX reference (same bf16 weights, f32 math) for a sanity check."""
    h = params["h"]; d_model = params["d_model"]; dk = d_model // h
    wq = params["wq_t"].astype(jnp.float32)
    wk = params["wk_t"].astype(jnp.float32)
    wv = params["wv_t"].astype(jnp.float32)
    wo = params["wo_t"].astype(jnp.float32)
    B, Sq, _ = query.shape; Sk = key.shape[1]
    q = (query @ wq).reshape(B, Sq, h, dk).transpose(0, 2, 1, 3)
    k = (key @ wk).reshape(B, Sk, h, dk).transpose(0, 2, 1, 3)
    v = (value @ wv).reshape(B, Sk, h, dk).transpose(0, 2, 1, 3)
    s = jnp.einsum("bhqd,bhkd->bhqk", q, k) / math.sqrt(dk)
    if mask is not None:
        m = jnp.asarray(mask)
        if m.ndim == 2:
            m = m[None]
        s = jnp.where(m[:, None] != 0, s, -1e30)
    p = jax.nn.softmax(s, axis=-1)
    ctx = jnp.einsum("bhqk,bhkd->bhqd", p, v).transpose(0, 2, 1, 3).reshape(B, Sq, d_model)
    return ctx @ wo + params["bo"]


if __name__ == "__main__":
    # Small deterministic example: h=4 heads, d_model=32, d_k=d_v=8, batch=2, seq=8.
    h, d_model, d_k, d_v = 4, 32, 8, 8
    B, S = 2, 8
    emb = d_k * h  # input embedding size expected by the linear layers

    root = jax.random.PRNGKey(0)
    k_par, k_q, k_k, k_v = jax.random.split(root, 4)

    params = init_params(k_par, h, d_model, d_k, d_v)
    query = jax.random.normal(k_q, (B, S, emb), jnp.float32)
    key_in = jax.random.normal(k_k, (B, S, emb), jnp.float32)
    value = jax.random.normal(k_v, (B, S, emb), jnp.float32)

    # Full (B, Sq, Sk) mask: last two key positions of batch 1 masked out.
    mask = jnp.ones((B, S, S), dtype=jnp.float32)
    mask = mask.at[1, :, -2:].set(0.0)

    # 1) cross-style call (separate Q/K/V projections) with a full mask
    out = multi_headed_attention(params, query, key_in, value, mask=mask)
    out = jax.block_until_ready(out)
    assert out.shape == (B, S, h * d_v), out.shape
    assert bool(jnp.all(jnp.isfinite(out))), "non-finite output"
    ref = _reference_mha(params, query, key_in, value, mask=mask)
    assert float(jnp.max(jnp.abs(out - ref))) < 0.1, "mismatch vs reference"

    # 2) self-attention call exercises the fused (3-output) QKV projection path
    out_self = multi_headed_attention(params, query, query, query, mask=None)
    out_self = jax.block_until_ready(out_self)
    assert out_self.shape == (B, S, h * d_v), out_self.shape
    assert bool(jnp.all(jnp.isfinite(out_self))), "non-finite output (self-attn)"
    ref_self = _reference_mha(params, query, query, query, mask=None)
    assert float(jnp.max(jnp.abs(out_self - ref_self))) < 0.1, "mismatch (self-attn)"

    # 3) compact (B, 1, Sk) padding mask path (no (B,Sq,Sk) materialization)
    pad_mask = jnp.ones((B, 1, S), jnp.float32).at[1, 0, -2:].set(0.0)
    out_pad = multi_headed_attention(params, query, query, query, mask=pad_mask)
    out_pad = jax.block_until_ready(out_pad)
    assert out_pad.shape == (B, S, h * d_v), out_pad.shape
    ref_pad = _reference_mha(params, query, query, query, mask=pad_mask)
    assert float(jnp.max(jnp.abs(out_pad - ref_pad))) < 0.1, "mismatch (pad mask)"

    print("KERNEL_OK")
</pallas_src>

<mosaic_0001>
module attributes {stable_mosaic.version = 11 : i64} {
  func.func @_linear_kernel(%arg0: i32, %arg1: i32, %arg2: i32, %arg3: memref<16x32xbf16, #tpu.memory_space<vmem>>, %arg4: memref<32x32xbf16, #tpu.memory_space<vmem>>, %arg5: memref<16x32xbf16, #tpu.memory_space<vmem>>, %arg6: memref<16x32xf32, #tpu.memory_space<vmem>>) attributes {dimension_semantics = [#tpu.dimension_semantics<parallel>, #tpu.dimension_semantics<parallel>, #tpu.dimension_semantics<arbitrary>], iteration_bounds = array<i64: 1, 1, 1>, scalar_prefetch = 0 : i64, scratch_operands = 1 : i64, tpu.core_type = #tpu.core_type<tc>, window_params = [{transform_indices = @transform_0, window_bounds = array<i64: 16, 32>}, {transform_indices = @transform_1, window_bounds = array<i64: 32, 32>}, {transform_indices = @transform_2, window_bounds = array<i64: 16, 32>}]} {
    %c0_i32 = arith.constant 0 : i32
    %0 = arith.cmpi eq, %arg2, %c0_i32 : i32
    %1 = arith.extui %0 : i1 to i32
    %c0_i32_0 = arith.constant 0 : i32
    %2 = arith.cmpi ne, %1, %c0_i32_0 : i32
    scf.if %2 {
      %cst_10 = arith.constant 0.000000e+00 : f32
      %12 = vector.broadcast %cst_10 : f32 to vector<16x32xf32>
      %c0_11 = arith.constant 0 : index
      %c0_12 = arith.constant 0 : index
      %13 = vector.load %arg6[%c0_11, %c0_12] : memref<16x32xf32, #tpu.memory_space<vmem>>, vector<16x32xf32>
      tpu.vector_store %arg6[%c0_11, %c0_12], %12 {strides = array<i32>} : memref<16x32xf32, #tpu.memory_space<vmem>>, vector<16x32xf32>,
    } else {
    }
    %c0 = arith.constant 0 : index
    %c0_1 = arith.constant 0 : index
    %3 = vector.load %arg6[%c0, %c0_1] : memref<16x32xf32, #tpu.memory_space<vmem>>, vector<16x32xf32>
    %c0_2 = arith.constant 0 : index
    %c0_3 = arith.constant 0 : index
    %4 = vector.load %arg3[%c0_2, %c0_3] : memref<16x32xbf16, #tpu.memory_space<vmem>>, vector<16x32xbf16>
    %c0_4 = arith.constant 0 : index
    %c0_5 = arith.constant 0 : index
    %5 = vector.load %arg4[%c0_4, %c0_5] : memref<32x32xbf16, #tpu.memory_space<vmem>>, vector<32x32xbf16>
    %cst = arith.constant dense<0.000000e+00> : vector<16x32xf32>
    %6 = tpu.matmul %4, %5, %cst {dimension_numbers = #tpu.dot_dimension_numbers<[1], [0], [0], [1], [0, 0, 1, 1], [], []>} : vector<16x32xbf16>, vector<32x32xbf16>, vector<16x32xf32> -> vector<16x32xf32>
    %7 = arith.addf %3, %6 : vector<16x32xf32>
    %c0_6 = arith.constant 0 : index
    %c0_7 = arith.constant 0 : index
    %8 = vector.load %arg6[%c0_6, %c0_7] : memref<16x32xf32, #tpu.memory_space<vmem>>, vector<16x32xf32>
    tpu.vector_store %arg6[%c0_6, %c0_7], %7 {strides = array<i32>} : memref<16x32xf32, #tpu.memory_space<vmem>>, vector<16x32xf32>,
    %c0_i32_8 = arith.constant 0 : i32
    %9 = arith.cmpi eq, %arg2, %c0_i32_8 : i32
    %10 = arith.extui %9 : i1 to i32
    %c0_i32_9 = arith.constant 0 : i32
    %11 = arith.cmpi ne, %10, %c0_i32_9 : i32
    scf.if %11 {
      %c0_10 = arith.constant 0 : index
      %c0_11 = arith.constant 0 : index
      %12 = vector.load %arg6[%c0_10, %c0_11] : memref<16x32xf32, #tpu.memory_space<vmem>>, vector<16x32xf32>
      %13 = arith.truncf %12 : vector<16x32xf32> to vector<16x32xbf16>
      %c0_12 = arith.constant 0 : index
      %c0_13 = arith.constant 0 : index
      %14 = vector.load %arg5[%c0_12, %c0_13] : memref<16x32xbf16, #tpu.memory_space<vmem>>, vector<16x32xbf16>
      tpu.vector_store %arg5[%c0_12, %c0_13], %13 {strides = array<i32>} : memref<16x32xbf16, #tpu.memory_space<vmem>>, vector<16x32xbf16>,
    } else {
    }
    return
  }
  func.func @transform_0(%arg0: i32, %arg1: i32, %arg2: i32) -> (i32, i32) {
    %c0_i32 = arith.constant 0 : i32
    return %arg0, %arg2 : i32, i32
  }
  func.func @transform_1(%arg0: i32, %arg1: i32, %arg2: i32) -> (i32, i32) {
    %c0_i32 = arith.constant 0 : i32
    return %arg2, %arg1 : i32, i32
  }
  func.func @transform_2(%arg0: i32, %arg1: i32, %arg2: i32) -> (i32, i32) {
    %c0_i32 = arith.constant 0 : i32
    return %arg0, %arg1 : i32, i32
  }
}

</mosaic_0001>

<bundles_post_ra>
// kernel: tpu_custom_call.1
= control target key start
LH: loop header
LB: loop body
LE: loop exit
PB: predicated region body
PF: predicated region fallthrough
CT: control target
= control target key end

     0   :  { %7 = vsyncpa [#allocation4], 0  ;;  %s329_s0 = inlined_call_operand.hbm [shape: bf16[16,32], index: 0, kind: input, shape index: {}]   ;;  %s330_s1 = inlined_call_operand.hbm [shape: bf16[32,32], index: 1, kind: input, shape index: {}]   ;;  %s331_s2 = inlined_call_operand.hbm [shape: bf16[16,32], index: 2, kind: output, shape index: {}]  }
   0x1   :  { %8 = vsyncpa [#allocation7], 0 }
   0x2   :  { %9 = vsyncpa [#allocation5], 0  ;;  %s257_s9 = smov [#allocation3]   ;;  %s185_s13 = scalar_lea.hbm %s329_s0, 128 }
   0x3   :  { %s15_s10 = sshll.u32 %s257_s9, 4  ;;  %p186_p0 = scmp.ne.s32.totalorder %s329_s0, %s185_s13  ;;  %s16_s10 = int_to_ptr.vmem [resolvable:$true] %s15_s10 }
   0x4   :  { %p189_p1 = scmp.lt.u32.totalorder %s185_s13, %s329_s0 }
   0x6   :  { %p191_p2 = pnand %p189_p1, %p186_p0 }
   0x8   :  { %194 = shalt.err (!%p191_p2)
}
   0x9   :  { %s195_s18 = scalar_lea.vmem %s16_s10, 128  ;;  %p200_p4 = scmp.lt.s32.totalorder %s16_s10, %s16_s10 }
   0xa   :  { %p196_p3 = scmp.ne.s32.totalorder %s16_s10, %s195_s18  ;;  %p201_p5 = scmp.lt.s32.totalorder %s195_s18, %s195_s18 }
   0xc   :  { %p202_p6 = por %p201_p5, %p200_p4 }
   0xe   :  { %p203_p7 = pnand %p202_p6, %p196_p3 }
  0x10   :  { %206 = shalt.err (!%p203_p7)
}
  0x11   :  { %s258_s19 = smov 64   ;;  %s259_s20 = smov 4  }
  0x12   :  { %21 = dma.hbm_to_vmem [thread:$0]  %s329_s0, 128, %s16_s10, [#allocation4], %s258_s19, %s258_s19, %s259_s20  }
  0x13   :  { %s260_s23 = smov [#allocation6]   ;;  %s207_s27 = scalar_lea.hbm %s330_s1, 256 }
  0x14   :  { %s27_s24 = sshll.u32 %s260_s23, 4  ;;  %p208_p8 = scmp.ne.s32.totalorder %s330_s1, %s207_s27  ;;  %s28_s24 = int_to_ptr.vmem [resolvable:$true] %s27_s24 }
  0x15   :  { %p211_p9 = scmp.lt.u32.totalorder %s207_s27, %s330_s1 }
  0x17   :  { %p213_p10 = pnand %p211_p9, %p208_p8 }
  0x19   :  { %216 = shalt.err (!%p213_p10)
}
  0x1a   :  { %s217_s4 = scalar_lea.vmem %s28_s24, 256  ;;  %p222_p12 = scmp.lt.s32.totalorder %s28_s24, %s28_s24 }
  0x1b   :  { %p218_p11 = scmp.ne.s32.totalorder %s28_s24, %s217_s4  ;;  %p223_p13 = scmp.lt.s32.totalorder %s217_s4, %s217_s4 }
  0x1d   :  { %p224_p0 = por %p223_p13, %p222_p12 }
  0x1f   :  { %p225_p1 = pnand %p224_p0, %p218_p11 }
  0x21   :  { %228 = shalt.err (!%p225_p1)
}
  0x22   :  { %33 = dma.hbm_to_vmem [thread:$0]  %s330_s1, 256, %s28_s24, [#allocation7], %s258_s19, %s258_s19, %s259_s20  }
  0x23   :  { %251 = dma.done.wait [#allocation4], 128  }
  0x24   :  { %252 = vsyncadd [#allocation4], 4294967168 }
  0x25   :  { %253 = dma.done.wait [#allocation7], 256  }
  0x26   :  { %254 = vsyncadd [#allocation7], 4294967040  ;;  %vm45_vm0 = vcmask 261120   ;;  %v261_v0 = vmov 0.0   ;;  %vm262_vm1 = vmmov 0   ;;  %v182_v1 = vld [vmem:[#allocation6] sm:$0xff]  }
  0x27   :  { %167 = vmatprep.subr.bf16.mxu0 %v261_v0  ;;  %171 = vmatprep.mubr.msk.bf16.mxu0 %vm262_vm1, %v261_v0  ;;  %46 = vst.msk [vmem:[#allocation2] sm:$0xff] %vm45_vm0, %v261_v0  ;;  %47 = vst.msk [vmem:[#allocation2 + $0x8] sm:$0xff] %vm45_vm0, %v261_v0  ;;  %v183_v2 = vld [vmem:[#allocation6 + $0x8] sm:$0xff]   ;;  %v184_v3 = vld [vmem:[#allocation3] sm:$0xff]   ;;  %vm135_vm2 = vcmask 257024   ;;  %s263_s1 = smov [#allocation8]  }
  0x28   :  { %168 = vmatpush3.bf16.msra.mxu0 %v182_v1  ;;  %s143_s6 = sshll.u32 %s263_s1, 4  ;;  %s144_s6 = int_to_ptr.vmem [resolvable:$true] %s143_s6 }
  0x29   :  { %169 = vmatprep.subr.bf16.mxu0 %v261_v0  ;;  %s229_s7 = scalar_lea.vmem %s144_s6, 128  ;;  %p234_p3 = scmp.lt.s32.totalorder %s144_s6, %s144_s6 }
  0x2a   :  { %p230_p2 = scmp.ne.s32.totalorder %s144_s6, %s229_s7  ;;  %p235_p4 = scmp.lt.s32.totalorder %s229_s7, %s229_s7 }
  0x2c   :  { %170 = vmatpush3.bf16.msra.mxu0 %v183_v2  ;;  %p236_p5 = por %p235_p4, %p234_p3 }
  0x2e   :  { %v48_v4 = vld [vmem:[#allocation2] sm:$0xff]  ;;  %v49_v6 = vld [vmem:[#allocation2 + $0x8] sm:$0xff]  ;;  %p237_p6 = pnand %p236_p5, %p230_p2 }
  0x2f   :  { %172 = vmatmul.mubr.msk.bf16.vlgmr.msra.gmra.mrb[0].mxu0 %vm45_vm0, %v184_v3 }
 0x102   :  { %v111_v5 = vpop.f32.mrb[0].mxu0 }
 0x103   :  { %v118_v7 = vadd.f32 %v111_v5, %v48_v4  ;;  %v173_v8 = vpop.f32.mrb[1].mxu0 }
 0x104   :  { %v114_v9 = vpop.f32.mrb[2].mxu0 }
 0x105   :  { %120 = vst.msk [vmem:[#allocation2] sm:$0xff] %vm45_vm0, %v118_v7  ;;  %v119_v10 = vadd.f32 %v114_v9, %v49_v6  ;;  %v174_v11 = vpop.f32.mrb[3].mxu0 }
 0x107   :  { %121 = vst.msk [vmem:[#allocation2 + $0x8] sm:$0xff] %vm45_vm0, %v119_v10 }
 0x10c   :  { %v125_v12 = vld [vmem:[#allocation2] sm:$0xff] }
 0x10d   :  { %v162_v13 = vpack.c.bf16 %v125_v12, %v125_v12 }
 0x10e   :  { %v126_v14 = vld [vmem:[#allocation2 + $0x8] sm:$0xff] }
 0x10f   :  { %v163_v15 = vpack.c.bf16 %v126_v14, %v126_v14  ;;  %136 = vst.msk [vmem:[#allocation8] sm:$0xf] %vm135_vm2, %v162_v13 }
 0x111   :  { %137 = vst.msk [vmem:[#allocation8 + $0x4] sm:$0xf] %vm135_vm2, %v163_v15 }
 0x112   :  { %240 = shalt.err (!%p237_p6)
}
 0x113   :  { %s241_s10 = scalar_lea.hbm %s331_s2, 128 }
 0x114   :  { %p242_p7 = scmp.ne.s32.totalorder %s331_s2, %s241_s10  ;;  %p245_p8 = scmp.lt.u32.totalorder %s241_s10, %s331_s2 }
 0x116   :  { %p247_p9 = pnand %p245_p8, %p242_p7 }
 0x118   :  { %250 = shalt.err (!%p247_p9)
}
 0x119   :  { %149 = dma.vmem_to_hbm [thread:$0]  %s144_s6, 128, %s331_s2, [#allocation5], %s258_s19, %s258_s19, %s259_s20  }
 0x11a   :  { %255 = dma.done.wait [#allocation5], 128  }
 0x11b   :  { %256 = vsyncadd [#allocation5], 4294967168 }
 0x11c   :  { %153 = vsyncpa [#allocation4], 1 }
 0x11d   :  { %154 = vsyncpa [#allocation7], 1 }
 0x11e   :  { %155 = vsyncpa [#allocation5], 1 }

</bundles_post_ra>
